<compile_context>
chip_gen: v7x
topology: tpu7x:2x2x1
jax: 0.10.0
libtpu: 0.0.40
codegen_flags: <defaults>
</compile_context>

<pallas_src>
import jax
import jax.numpy as jnp
from jax.experimental import pallas as pl
from jax.experimental.pallas import tpu as pltpu

_LANES = 128                 # multiple of 128 -> unmasked stores, minimal padding
_MIN_SPLIT_ROWS = 2048       # only split sub-tile arrays this tall (v7x megacore)


def _binary_filter_kernel(x_ref, y_ref, o_ref):
    # Binary structured-grid combine (elementwise) — the hot path shared by
    # concrete BinaryOperators built on this base class.
    o_ref[...] = x_ref[...] + y_ref[...]


def _vmem_budget_bytes():
    # Spend at most ~half of physical VMEM on this call (3 operands x 2 bufs):
    # 32 MiB on v7x (64 MiB physical / TC), 64 MiB on v5e/v6e (128 MiB).
    cap = 64 * 1024 * 1024
    try:
        info = pltpu.get_tpu_info()
        cap = int(getattr(info, "vmem_capacity_bytes", cap))
    except Exception:
        pass
    return min(64 * 1024 * 1024, max(16 * 1024 * 1024, cap // 2))


def _choose_tile_rows(itemsize, vmem_budget):
    # 3 operands x 2 pipeline buffers -> keep 6*tile well under the budget.
    # Multiple of 32 so the same choice is valid for f32/bf16/int8 sublane
    # packing and satisfies the (8,128) block-shape rule.
    tile_target = vmem_budget // 8
    tr = (tile_target // (_LANES * itemsize)) // 32 * 32
    return max(32, tr)


def _binary_filter_2d(x2d, y2d, tile_rows, vmem_budget):
    rows, lanes = x2d.shape
    itemsize = jnp.dtype(x2d.dtype).itemsize
    total = rows * lanes
    spec = pl.BlockSpec((tile_rows, lanes), lambda i: (i, 0))
    return pl.pallas_call(
        _binary_filter_kernel,
        out_shape=jax.ShapeDtypeStruct((rows, lanes), x2d.dtype),
        grid=(pl.cdiv(rows, tile_rows),),
        in_specs=[spec, spec],
        out_specs=spec,
        compiler_params=pltpu.CompilerParams(
            dimension_semantics=("parallel",),
            vmem_limit_bytes=int(vmem_budget),
        ),
        cost_estimate=pl.CostEstimate(
            flops=total,
            transcendentals=0,
            bytes_accessed=3 * total * itemsize,
        ),
    )(x2d, y2d)


class Filter:
    """JAX/Pallas mirror of the abstract PyTorch `Filter` base module."""

    def __init__(self):
        # The PyTorch base class allocates no parameters.
        pass

    def forward(self, **kwargs):
        # Abstract in the reference module.
        raise NotImplementedError

    def c1(self, **kwargs):
        return False

    # Concrete helper exercised here so the Pallas hot path is runnable:
    # elementwise binary combine of two structured grids of any shape.
    def binary_combine(self, x, y):
        assert x.shape == y.shape and x.dtype == y.dtype
        orig_shape = x.shape
        total = 1
        for d in orig_shape:
            total *= int(d)

        itemsize = jnp.dtype(x.dtype).itemsize
        vmem_budget = _vmem_budget_bytes()
        tile_rows = _choose_tile_rows(itemsize, vmem_budget)

        # Flatten to a lane-dense (rows, 128) slab.  With 128 lanes most real
        # shapes need no padding at all; otherwise pad by < 128 elements only.
        rows = pl.cdiv(total, _LANES)
        pad = rows * _LANES - total

        xf = x.reshape(total)
        yf = y.reshape(total)
        if pad > 0:
            xf = jnp.pad(xf, (0, pad))
            yf = jnp.pad(yf, (0, pad))

        if rows <= tile_rows:
            if rows >= _MIN_SPLIT_ROWS:
                # >= 2 grid steps so both v7x TensorCores participate.
                tile_rows = ((pl.cdiv(rows, 2) + 31) // 32) * 32
            else:
                # Single block == full array (legal for any height).
                tile_rows = rows
        # else: rows > tile_rows -> grid = cdiv(rows, tile_rows); the partial
        # final block is masked by Pallas (no rounding-up, no wasted DMA).

        x2d = xf.reshape(rows, _LANES)
        y2d = yf.reshape(rows, _LANES)
        out2d = _binary_filter_2d(x2d, y2d, tile_rows, vmem_budget)

        if pad > 0:
            return out2d.reshape(rows * _LANES)[:total].reshape(orig_shape)
        return out2d.reshape(orig_shape)


if __name__ == "__main__":
    key = jax.random.PRNGKey(0)
    kx, ky = jax.random.split(key)
    # NCHW, small shapes: batch=2, channels=4, spatial=16x16
    x = jax.random.normal(kx, (2, 4, 16, 16), dtype=jnp.float32)
    y = jax.random.normal(ky, (2, 4, 16, 16), dtype=jnp.float32)

    filt = Filter()
    assert filt.c1() is False

    out = filt.binary_combine(x, y)
    out = jax.block_until_ready(out)

    # Verify against plain-JAX reference of the hot path.
    ref = x + y
    assert out.shape == (2, 4, 16, 16)
    assert out.dtype == jnp.float32
    assert jnp.allclose(out, ref, atol=1e-6, rtol=1e-6)

    print("KERNEL_OK")
</pallas_src>

<mosaic_0001>
module attributes {stable_mosaic.version = 11 : i64} {
  func.func @_binary_filter_kernel(%arg0: i32, %arg1: memref<16x128xf32, #tpu.memory_space<vmem>>, %arg2: memref<16x128xf32, #tpu.memory_space<vmem>>, %arg3: memref<16x128xf32, #tpu.memory_space<vmem>>) attributes {dimension_semantics = [#tpu.dimension_semantics<parallel>], iteration_bounds = array<i64: 1>, scalar_prefetch = 0 : i64, scratch_operands = 0 : i64, tpu.core_type = #tpu.core_type<tc>, window_params = [{transform_indices = @transform_0, window_bounds = array<i64: 16, 128>}, {transform_indices = @transform_1, window_bounds = array<i64: 16, 128>}, {transform_indices = @transform_2, window_bounds = array<i64: 16, 128>}]} {
    %c0 = arith.constant 0 : index
    %c0_0 = arith.constant 0 : index
    %0 = vector.load %arg1[%c0, %c0_0] : memref<16x128xf32, #tpu.memory_space<vmem>>, vector<16x128xf32>
    %c0_1 = arith.constant 0 : index
    %c0_2 = arith.constant 0 : index
    %1 = vector.load %arg2[%c0_1, %c0_2] : memref<16x128xf32, #tpu.memory_space<vmem>>, vector<16x128xf32>
    %2 = arith.addf %0, %1 : vector<16x128xf32>
    %c0_3 = arith.constant 0 : index
    %c0_4 = arith.constant 0 : index
    %3 = vector.load %arg3[%c0_3, %c0_4] : memref<16x128xf32, #tpu.memory_space<vmem>>, vector<16x128xf32>
    tpu.vector_store %arg3[%c0_3, %c0_4], %2 {strides = array<i32>} : memref<16x128xf32, #tpu.memory_space<vmem>>, vector<16x128xf32>,
    return
  }
  func.func @transform_0(%arg0: i32) -> (i32, i32) {
    %c0_i32 = arith.constant 0 : i32
    %c0_i32_0 = arith.constant 0 : i32
    return %arg0, %c0_i32 : i32, i32
  }
  func.func @transform_1(%arg0: i32) -> (i32, i32) {
    %c0_i32 = arith.constant 0 : i32
    %c0_i32_0 = arith.constant 0 : i32
    return %arg0, %c0_i32 : i32, i32
  }
  func.func @transform_2(%arg0: i32) -> (i32, i32) {
    %c0_i32 = arith.constant 0 : i32
    %c0_i32_0 = arith.constant 0 : i32
    return %arg0, %c0_i32 : i32, i32
  }
}

</mosaic_0001>

<bundles_post_ra>
// kernel: tpu_custom_call.1
= control target key start
LH: loop header
LB: loop body
LE: loop exit
PB: predicated region body
PF: predicated region fallthrough
CT: control target
= control target key end

     0   :  { %7 = vsyncpa [#allocation3], 0  ;;  %s208_s0 = inlined_call_operand.hbm [shape: f32[16,128], index: 0, kind: input, shape index: {}]   ;;  %s209_s1 = inlined_call_operand.hbm [shape: f32[16,128], index: 1, kind: input, shape index: {}]   ;;  %s210_s2 = inlined_call_operand.hbm [shape: f32[16,128], index: 2, kind: output, shape index: {}]  }
   0x1   :  { %8 = vsyncpa [#allocation6], 0 }
   0x2   :  { %9 = vsyncpa [#allocation4], 0  ;;  %s143_s9 = smov [#allocation2]   ;;  %s71_s13 = scalar_lea.hbm %s208_s0, 256 }
   0x3   :  { %s15_s10 = sshll.u32 %s143_s9, 4  ;;  %p72_p0 = scmp.ne.s32.totalorder %s208_s0, %s71_s13  ;;  %s16_s10 = int_to_ptr.vmem [resolvable:$true] %s15_s10 }
   0x4   :  { %p75_p1 = scmp.lt.u32.totalorder %s71_s13, %s208_s0 }
   0x6   :  { %p77_p2 = pnand %p75_p1, %p72_p0 }
   0x8   :  { %80 = shalt.err (!%p77_p2)
}
   0x9   :  { %s81_s18 = scalar_lea.vmem %s16_s10, 256  ;;  %p86_p4 = scmp.lt.s32.totalorder %s16_s10, %s16_s10 }
   0xa   :  { %p82_p3 = scmp.ne.s32.totalorder %s16_s10, %s81_s18  ;;  %p87_p5 = scmp.lt.s32.totalorder %s81_s18, %s81_s18 }
   0xc   :  { %p88_p6 = por %p87_p5, %p86_p4 }
   0xe   :  { %p89_p7 = pnand %p88_p6, %p82_p3 }
  0x10   :  { %92 = shalt.err (!%p89_p7)
}
  0x11   :  { %s144_s19 = smov 128   ;;  %s145_s20 = smov 8  }
  0x12   :  { %21 = dma.hbm_to_vmem [thread:$0]  %s208_s0, 256, %s16_s10, [#allocation3], %s144_s19, %s144_s19, %s145_s20  }
  0x13   :  { %s146_s23 = smov [#allocation5]   ;;  %s93_s27 = scalar_lea.hbm %s209_s1, 256 }
  0x14   :  { %s27_s24 = sshll.u32 %s146_s23, 4  ;;  %p94_p8 = scmp.ne.s32.totalorder %s209_s1, %s93_s27  ;;  %s28_s24 = int_to_ptr.vmem [resolvable:$true] %s27_s24 }
  0x15   :  { %p97_p9 = scmp.lt.u32.totalorder %s93_s27, %s209_s1 }
  0x17   :  { %p99_p10 = pnand %p97_p9, %p94_p8 }
  0x19   :  { %102 = shalt.err (!%p99_p10)
}
  0x1a   :  { %s103_s4 = scalar_lea.vmem %s28_s24, 256  ;;  %p108_p12 = scmp.lt.s32.totalorder %s28_s24, %s28_s24 }
  0x1b   :  { %p104_p11 = scmp.ne.s32.totalorder %s28_s24, %s103_s4  ;;  %p109_p13 = scmp.lt.s32.totalorder %s103_s4, %s103_s4 }
  0x1d   :  { %p110_p0 = por %p109_p13, %p108_p12 }
  0x1f   :  { %p111_p1 = pnand %p110_p0, %p104_p11 }
  0x21   :  { %114 = shalt.err (!%p111_p1)
}
  0x22   :  { %33 = dma.hbm_to_vmem [thread:$0]  %s209_s1, 256, %s28_s24, [#allocation6], %s144_s19, %s144_s19, %s145_s20  }
  0x23   :  { %137 = dma.done.wait [#allocation3], 256  }
  0x24   :  { %138 = vsyncadd [#allocation3], 4294967040 }
  0x25   :  { %139 = dma.done.wait [#allocation6], 256  }
  0x26   :  { %140 = vsyncadd [#allocation6], 4294967040  ;;  %s147_s6 = smov [#allocation7]   ;;  %v40_v0 = vld [vmem:[#allocation2] sm:$0xff]  ;;  %v42_v1 = vld [vmem:[#allocation5] sm:$0xff] }
  0x27   :  { %s53_s7 = sshll.u32 %s147_s6, 4  ;;  %v41_v2 = vld [vmem:[#allocation2 + $0x8] sm:$0xff]  ;;  %v44_v3 = vadd.f32 %v42_v1, %v40_v0  ;;  %v43_v4 = vld [vmem:[#allocation5 + $0x8] sm:$0xff]  ;;  %s54_s7 = int_to_ptr.vmem [resolvable:$true] %s53_s7 }
  0x28   :  { %v45_v5 = vadd.f32 %v43_v4, %v41_v2  ;;  %s115_s8 = scalar_lea.vmem %s54_s7, 256  ;;  %p120_p3 = scmp.lt.s32.totalorder %s54_s7, %s54_s7 }
  0x29   :  { %46 = vst [vmem:[#allocation7] sm:$0xff] %v44_v3  ;;  %p116_p2 = scmp.ne.s32.totalorder %s54_s7, %s115_s8  ;;  %p121_p4 = scmp.lt.s32.totalorder %s115_s8, %s115_s8 }
  0x2a   :  { %47 = vst [vmem:[#allocation7 + $0x8] sm:$0xff] %v45_v5 }
  0x2b   :  { %p122_p5 = por %p121_p4, %p120_p3 }
  0x2d   :  { %p123_p6 = pnand %p122_p5, %p116_p2 }
  0x2f   :  { %126 = shalt.err (!%p123_p6)
}
  0x30   :  { %s127_s10 = scalar_lea.hbm %s210_s2, 256 }
  0x31   :  { %p128_p7 = scmp.ne.s32.totalorder %s210_s2, %s127_s10  ;;  %p131_p8 = scmp.lt.u32.totalorder %s127_s10, %s210_s2 }
  0x33   :  { %p133_p9 = pnand %p131_p8, %p128_p7 }
  0x35   :  { %136 = shalt.err (!%p133_p9)
}
  0x36   :  { %59 = dma.vmem_to_hbm [thread:$0]  %s54_s7, 256, %s210_s2, [#allocation4], %s144_s19, %s144_s19, %s145_s20  }
  0x37   :  { %141 = dma.done.wait [#allocation4], 256  }
  0x38   :  { %142 = vsyncadd [#allocation4], 4294967040 }
  0x39   :  { %63 = vsyncpa [#allocation3], 1 }
  0x3a   :  { %64 = vsyncpa [#allocation6], 1 }
  0x3b   :  { %65 = vsyncpa [#allocation4], 1 }

</bundles_post_ra>
